<compile_context>
chip_gen: v5e
topology: v5e:2x2
jax: 0.10.0
libtpu: 0.0.40
codegen_flags: <defaults>
</compile_context>

<pallas_src>
import math
import functools

import jax
import jax.numpy as jnp
from jax.experimental import pallas as pl
from jax.experimental.pallas import tpu as pltpu


# ----------------------------------------------------------------------------
# pe buffer construction (matches torch __init__ exactly)
# ----------------------------------------------------------------------------
def make_positional_encoding(seq_len: int, d_model: int) -> jnp.ndarray:
    position = jnp.arange(seq_len, dtype=jnp.float32)[:, None]              # (S, 1)
    div_term = jnp.exp(
        jnp.arange(0, d_model, 2, dtype=jnp.float32)
        * (-math.log(10000.0) / d_model)
    )                                                                        # (D/2,)
    angles = position * div_term                                             # (S, D/2)
    pe = jnp.zeros((seq_len, d_model), dtype=jnp.float32)
    pe = pe.at[:, 0::2].set(jnp.sin(angles))
    pe = pe.at[:, 1::2].set(jnp.cos(angles))
    return pe                                                                # (S, D)


# ----------------------------------------------------------------------------
# Pallas kernels (elementwise, flattened 2-D layout: rows = batch, cols = S*D)
# ----------------------------------------------------------------------------
def _pe_add_kernel(x_ref, pe_ref, o_ref):
    # x_ref: (Bt, tC), pe_ref: (1, tC) -> broadcast add over the batch-tile rows.
    o_ref[...] = (x_ref[...] + pe_ref[...]).astype(o_ref.dtype)


def _pe_add_dropout_kernel(x_ref, pe_ref, bits_ref, o_ref, *, threshold, inv_keep):
    # Integer-threshold dropout: keep iff bits >= rate * 2**32 (P = 1 - rate),
    # scale kept values by 1/(1-rate). Single compare + select + mul per elem.
    y = x_ref[...] + pe_ref[...]
    keep = bits_ref[...] >= jnp.uint32(threshold)
    o_ref[...] = jnp.where(keep, y * inv_keep, jnp.zeros_like(y)).astype(o_ref.dtype)


# ----------------------------------------------------------------------------
# Tile selection helpers
# ----------------------------------------------------------------------------
def _largest_multiple_divisor(n, unit, cap):
    """Largest multiple of `unit` that divides n and is <= max(unit, cap)."""
    best = unit
    t = unit
    limit = min(n, max(unit, cap))
    while t <= limit:
        if n % t == 0:
            best = t
        t += unit
    return best


# ----------------------------------------------------------------------------
# Wrapper (module forward equivalent)
# ----------------------------------------------------------------------------
def positional_encoding_forward(x, pe, *, dropout_rate=0.0, training=False, rng_key=None):
    """x: (B, S, D); pe: (seq_len, D) with seq_len >= S (the module's buffer)."""
    B, S, D = x.shape
    SD = S * D
    itemsize = x.dtype.itemsize

    # Flatten (S, D) into one lane-dense trailing axis; pe broadcasts over batch.
    x2 = x.reshape(B, SD)
    pe2 = pe[:S, :].astype(x.dtype).reshape(1, SD)   # matches self.pe[:, :x.shape[1], :]

    # ---- tile selection (≈1 MiB x-block, (8,128)-aligned) ----------------
    target_block_bytes = 1 << 20
    if B % 8 == 0:
        Bt = 8                              # sublane-aligned batch tile
    else:
        Bt = B                              # full dim also satisfies the layout rule
    if SD % 128 == 0:
        cap = max(128, target_block_bytes // (Bt * itemsize))
        tC = _largest_multiple_divisor(SD, 128, cap)
    else:
        tC = SD                             # no clean 128-divisor: full-width block

    # Grid ordered (col tiles, batch tiles): pe's block index is constant across
    # the inner axis, so Pallas skips its re-DMA between consecutive steps.
    grid = (SD // tC, B // Bt)
    x_map = lambda c, b: (b, c)
    pe_map = lambda c, b: (0, c)

    out_shape = jax.ShapeDtypeStruct((B, SD), x.dtype)
    compiler_params = pltpu.CompilerParams(
        dimension_semantics=("parallel", "parallel"),   # megacore-shardable on v7x
        vmem_limit_bytes=32 * 1024 * 1024,              # explicit budget, < v7x 64 MiB
    )

    if training and dropout_rate > 0.0:
        assert 0.0 < dropout_rate < 1.0, "dropout_rate must be in [0, 1)"
        if rng_key is None:
            rng_key = jax.random.PRNGKey(0)
        # TODO(synk): on real TPU, pltpu.prng_seed/prng_random_bits inside the kernel
        # would avoid streaming this bits array from HBM; those primitives do not
        # lower under the CPU interpreter, so mask bits are generated host-side.
        bits = jax.random.bits(rng_key, (B, SD), dtype=jnp.uint32)
        threshold = min(int(round(dropout_rate * (1 << 32))), (1 << 32) - 1)
        inv_keep = 1.0 / (1.0 - float(dropout_rate))
        kernel = functools.partial(
            _pe_add_dropout_kernel, threshold=threshold, inv_keep=inv_keep
        )
        out2 = pl.pallas_call(
            kernel,
            grid=grid,
            in_specs=[
                pl.BlockSpec((Bt, tC), x_map),
                pl.BlockSpec((1, tC), pe_map),
                pl.BlockSpec((Bt, tC), x_map),
            ],
            out_specs=pl.BlockSpec((Bt, tC), x_map),
            out_shape=out_shape,
            compiler_params=compiler_params,
        )(x2, pe2, bits)
    else:
        # Eval mode: dropout is identity (matches nn.Dropout in eval()).
        out2 = pl.pallas_call(
            _pe_add_kernel,
            grid=grid,
            in_specs=[
                pl.BlockSpec((Bt, tC), x_map),
                pl.BlockSpec((1, tC), pe_map),
            ],
            out_specs=pl.BlockSpec((Bt, tC), x_map),
            out_shape=out_shape,
            compiler_params=compiler_params,
        )(x2, pe2)

    return out2.reshape(B, S, D)


# ----------------------------------------------------------------------------
# Demo / correctness check
# ----------------------------------------------------------------------------
if __name__ == "__main__":
    d_model = 32
    seq_len = 8
    batch = 2
    dropout = 0.1

    key = jax.random.PRNGKey(0)
    key_x, key_drop = jax.random.split(key)
    x = jax.random.normal(key_x, (batch, seq_len, d_model), dtype=jnp.float32)

    pe = make_positional_encoding(seq_len, d_model)

    # Eval-mode forward (deterministic): out == x + pe
    out = positional_encoding_forward(x, pe, dropout_rate=dropout, training=False)
    out = jax.block_until_ready(out)
    ref = x + pe[None, :seq_len, :]
    assert out.shape == (batch, seq_len, d_model)
    assert jnp.allclose(out, ref, atol=1e-6), "mismatch vs reference (eval)"

    # Training-mode forward: every element is either dropped (0) or scaled.
    out_train = positional_encoding_forward(
        x, pe, dropout_rate=dropout, training=True, rng_key=key_drop
    )
    out_train = jax.block_until_ready(out_train)
    assert out_train.shape == (batch, seq_len, d_model)
    scaled = ref / (1.0 - dropout)
    structure_ok = jnp.isclose(out_train, 0.0, atol=1e-6) | jnp.isclose(
        out_train, scaled, rtol=1e-5, atol=1e-5
    )
    assert bool(jnp.all(structure_ok)), "training output is not {0, (x+pe)/(1-p)}"

    print("KERNEL_OK")
</pallas_src>

<mosaic_0001>
module attributes {stable_mosaic.version = 11 : i64} {
  func.func @_pe_add_kernel(%arg0: i32, %arg1: i32, %arg2: memref<2x256xf32, #tpu.memory_space<vmem>>, %arg3: memref<1x256xf32, #tpu.memory_space<vmem>>, %arg4: memref<2x256xf32, #tpu.memory_space<vmem>>) attributes {dimension_semantics = [#tpu.dimension_semantics<parallel>, #tpu.dimension_semantics<parallel>], iteration_bounds = array<i64: 1, 1>, scalar_prefetch = 0 : i64, scratch_operands = 0 : i64, tpu.core_type = #tpu.core_type<tc>, window_params = [{transform_indices = @transform_0, window_bounds = array<i64: 2, 256>}, {transform_indices = @transform_1, window_bounds = array<i64: 1, 256>}, {transform_indices = @transform_2, window_bounds = array<i64: 2, 256>}]} {
    %c0 = arith.constant 0 : index
    %c0_0 = arith.constant 0 : index
    %0 = vector.load %arg2[%c0, %c0_0] : memref<2x256xf32, #tpu.memory_space<vmem>>, vector<2x256xf32>
    %c0_1 = arith.constant 0 : index
    %c0_2 = arith.constant 0 : index
    %1 = vector.load %arg3[%c0_1, %c0_2] : memref<1x256xf32, #tpu.memory_space<vmem>>, vector<1x256xf32>
    %2 = vector.broadcast %1 : vector<1x256xf32> to vector<2x256xf32>
    %3 = arith.addf %0, %2 : vector<2x256xf32>
    %c0_3 = arith.constant 0 : index
    %c0_4 = arith.constant 0 : index
    %4 = vector.load %arg4[%c0_3, %c0_4] : memref<2x256xf32, #tpu.memory_space<vmem>>, vector<2x256xf32>
    tpu.vector_store %arg4[%c0_3, %c0_4], %3 {strides = array<i32>} : memref<2x256xf32, #tpu.memory_space<vmem>>, vector<2x256xf32>,
    return
  }
  func.func @transform_0(%arg0: i32, %arg1: i32) -> (i32, i32) {
    %c0_i32 = arith.constant 0 : i32
    return %arg1, %arg0 : i32, i32
  }
  func.func @transform_1(%arg0: i32, %arg1: i32) -> (i32, i32) {
    %c0_i32 = arith.constant 0 : i32
    %c0_i32_0 = arith.constant 0 : i32
    return %c0_i32, %arg0 : i32, i32
  }
  func.func @transform_2(%arg0: i32, %arg1: i32) -> (i32, i32) {
    %c0_i32 = arith.constant 0 : i32
    return %arg1, %arg0 : i32, i32
  }
}

</mosaic_0001>

<bundles_post_ra>
// kernel: tpu_custom_call.1
= control target key start
LH: loop header
LB: loop body
LE: loop exit
PB: predicated region body
PF: predicated region fallthrough
CT: control target
= control target key end

     0   :  { %7 = vsyncpa [#allocation3], 0  ;;  %s177_s0 = inlined_call_operand.hbm [shape: f32[2,256], index: 0, kind: input, shape index: {}]   ;;  %s178_s1 = inlined_call_operand.hbm [shape: f32[1,256], index: 1, kind: input, shape index: {}]   ;;  %s179_s2 = inlined_call_operand.hbm [shape: f32[2,256], index: 2, kind: output, shape index: {}]  }
   0x1   :  { %8 = vsyncpa [#allocation6], 0 }
   0x2   :  { %9 = vsyncpa [#allocation4], 0  ;;  %s15_s11 = sshll.u32 %s177_s0, 4  ;;  %s150_s12 = smov [#allocation2]   ;;  %s16_s11 = int_to_ptr.hbm [resolvable:$true] %s15_s11 }
   0x3   :  { %s17_s13 = sshll.u32 %s150_s12, 4  ;;  %s26_s16 = sshll.u32 %s178_s1, 4  ;;  %s18_s13 = int_to_ptr.vmem [resolvable:$true] %s17_s13  ;;  %s27_s16 = int_to_ptr.hbm [resolvable:$true] %s26_s16 }
   0x4   :  { %20 = dma.hbm_to_vmem [thread:$0]  %s16_s11, 64, %s18_s13, [#allocation3]  }
   0x5   :  { %s151_s17 = smov [#allocation5]  }
   0x6   :  { %s28_s18 = sshll.u32 %s151_s17, 4  ;;  %s29_s18 = int_to_ptr.vmem [resolvable:$true] %s28_s18 }
   0x7   :  { %31 = dma.hbm_to_vmem [thread:$0]  %s27_s16, 32, %s29_s18, [#allocation6]  }
   0x8   :  { %144 = dma.done.wait [#allocation3], 64  }
   0x9   :  { %145 = vsyncadd [#allocation3], 4294967232 }
   0xa   :  { %146 = dma.done.wait [#allocation6], 32  }
   0xb   :  { %147 = vsyncadd [#allocation6], 4294967264  ;;  %v41_v0 = vld [vmem:[#allocation5] sm:$0x3]  ;;  %vm46_vm0 = vcmask 1041408   ;;  %s152_s0 = smov [#allocation7]  }
   0xc   :  { %v43_v1 = vperm.slane %v41_v0, 0  ;;  %v44_v2 = vperm.slane %v41_v0, 1  ;;  %v40_v3 = vld [vmem:[#allocation2] sm:$0xf]  ;;  %s56_s19 = sshll.u32 %s152_s0, 4  ;;  %s58_s21 = sshll.u32 %s179_s2, 4  ;;  %s57_s19 = int_to_ptr.vmem [resolvable:$true] %s56_s19  ;;  %s59_s21 = int_to_ptr.hbm [resolvable:$true] %s58_s21 }
   0xe   :  { %v45_v4 = vrot.slane %v44_v2, 6 }
  0x10   :  { %v47_v5 = vsel %vm46_vm0, %v43_v1, %v45_v4 }
  0x11   :  { %v49_v6 = vadd.f32 %v47_v5, %v40_v3 }
  0x13   :  { %50 = vst [vmem:[#allocation7] sm:$0xf] %v49_v6 }
  0x14   :  { %61 = dma.vmem_to_hbm [thread:$0]  %s57_s19, 64, %s59_s21, [#allocation4]  }
  0x15   :  { %148 = dma.done.wait [#allocation4], 64  }
  0x16   :  { %149 = vsyncadd [#allocation4], 4294967232 }
  0x17   :  { %66 = vsyncpa [#allocation3], 1 }
  0x18   :  { %67 = vsyncpa [#allocation6], 1 }
  0x19   :  { %68 = vsyncpa [#allocation4], 1 }

</bundles_post_ra>
